<compile_context>
chip_gen: v6e
topology: v6e:2x2x1
jax: 0.10.0
libtpu: 0.0.40
codegen_flags: <defaults>
</compile_context>

<pallas_src>
import functools

import jax
import jax.numpy as jnp
from jax.experimental import pallas as pl
from jax.experimental.pallas import tpu as pltpu


_SUBLANES = 8
_LANES = 128


def _round_up(x, m):
    return (x + m - 1) // m * m


def _block_diag(a, b):
    ra, ca = a.shape
    rb, cb = b.shape
    top = jnp.concatenate([a, jnp.zeros((ra, cb), a.dtype)], axis=1)
    bot = jnp.concatenate([jnp.zeros((rb, ca), b.dtype), b], axis=1)
    return jnp.concatenate([top, bot], axis=0)


# ----------------------------------------------------------------------------- params / reference
def _init_branch_params(key, in_dim_gcn, in_dim_spec, n_latent_var, out_dim):
    """Deterministic parameter init for one GCN_FC branch (actor or critic)."""
    ks = jax.random.split(key, 6)
    H = n_latent_var
    scale = 0.1
    return dict(
        wg1=scale * jax.random.normal(ks[0], (in_dim_gcn, H), jnp.float32),
        bg1=jnp.zeros((1, H), jnp.float32),
        wg2=scale * jax.random.normal(ks[1], (H, H), jnp.float32),
        bg2=jnp.zeros((1, H), jnp.float32),
        ws=scale * jax.random.normal(ks[2], (in_dim_spec, H), jnp.float32),
        bs=jnp.zeros((1, H), jnp.float32),
        w2p=scale * jax.random.normal(ks[3], (H, H), jnp.float32),
        w2s=scale * jax.random.normal(ks[4], (H, H), jnp.float32),
        b2=jnp.zeros((1, H), jnp.float32),
        w3=scale * jax.random.normal(ks[5], (H, out_dim), jnp.float32),
        b3=jnp.zeros((1, out_dim), jnp.float32),
    )


def _reference_branch(p, x, spec, adj):
    """Pure-JAX unfused reference of one GCN_FC branch (for parity check)."""
    relu = lambda v: jnp.maximum(v, 0.0)
    ax = adj @ x
    h1 = relu(ax @ p["wg1"] + p["bg1"])
    h2 = relu(adj @ h1 @ p["wg2"] + p["bg2"])
    pooled = jnp.mean(h2, axis=0, keepdims=True)
    s = relu(spec @ p["ws"] + p["bs"])
    z = relu(pooled @ p["w2p"] + s @ p["w2s"] + p["b2"])
    return z @ p["w3"] + p["b3"]


# ----------------------------------------------------------------------------- model
class ActorCriticPallas:
    def __init__(self, in_dim_gcn, in_dim_spec, n_latent_var, out_dim, seed=0):
        H = n_latent_var
        self.out_dim = out_dim
        self.in_dim_gcn = in_dim_gcn
        self.in_dim_spec = in_dim_spec
        self.n_latent_var = H

        # lane width: must hold the fused actor||critic hidden (2H) plus the shifted s (another 2H),
        # the packed output row (2*out_dim+1) and every raw input feature width.
        lanes = _round_up(max(_LANES, 4 * H, 2 * out_dim + 1, in_dim_gcn, in_dim_spec), _LANES)
        self.lanes = lanes
        H2 = 2 * H

        key = jax.random.PRNGKey(seed)
        k_actor, k_critic = jax.random.split(key)
        # per-branch parameters (kept for parity checks against the unfused reference)
        self.actor_params = _init_branch_params(k_actor, in_dim_gcn, in_dim_spec, H, out_dim)
        self.critic_params = _init_branch_params(k_critic, in_dim_gcn, in_dim_spec, H, 1)
        a, c = self.actor_params, self.critic_params

        def place(block, r0, c0):
            """Embed a small block into a zero [lanes, lanes] tile (full-vreg, unmasked loads)."""
            out = jnp.zeros((lanes, lanes), jnp.float32)
            return out.at[r0:r0 + block.shape[0], c0:c0 + block.shape[1]].set(block)

        # fused actor||critic weights: concat input-side weights along lanes; hidden block-diagonal.
        wg1 = place(jnp.concatenate([a["wg1"], c["wg1"]], axis=1), 0, 0)          # rows 0..Dg-1
        wg2 = place(_block_diag(a["wg2"], c["wg2"]), 0, 0)                        # rows 0..2H-1
        ws = place(jnp.concatenate([a["ws"], c["ws"]], axis=1), 0, H2)            # cols shifted to 2H..4H-1
        w2 = (place(_block_diag(a["w2p"], c["w2p"]), 0, 0)                        # pooled rows 0..2H-1
              + place(_block_diag(a["w2s"], c["w2s"]), H2, 0))                    # s rows 2H..4H-1
        w3 = place(_block_diag(a["w3"], c["w3"]), 0, 0)                           # [2H, out_dim+1]

        # all five biases packed into one 8-sublane block (one bias per row)
        bias = jnp.zeros((_SUBLANES, lanes), jnp.float32)
        bias = bias.at[0, 0:H2].set(jnp.concatenate([a["bg1"], c["bg1"]], axis=1)[0])
        bias = bias.at[1, 0:H2].set(jnp.concatenate([a["bg2"], c["bg2"]], axis=1)[0])
        bias = bias.at[2, H2:2 * H2].set(jnp.concatenate([a["bs"], c["bs"]], axis=1)[0])  # shifted with ws
        bias = bias.at[3, 0:H2].set(jnp.concatenate([a["b2"], c["b2"]], axis=1)[0])
        bias = bias.at[4, 0:out_dim + 1].set(jnp.concatenate([a["b3"], c["b3"]], axis=1)[0])

        blocks = [("bias", bias), ("wg1", wg1), ("wg2", wg2), ("ws", ws), ("w2", w2), ("w3", w3)]
        layout = {}
        row = 0
        for name, blk in blocks:
            layout[name] = (row, int(blk.shape[0]))
            row += int(blk.shape[0])
        self.param_layout = layout
        # single lane-dense parameter slab -> ONE HBM->VMEM DMA, resident across the whole grid
        self.param_slab = jnp.concatenate([b for _, b in blocks], axis=0)          # [Rp, lanes]

        # param_slab is a *traced* argument: updating weights just means passing a new slab.
        self._forward = jax.jit(self._forward_impl)

    # ------------------------------------------------------------------- fused batched forward
    def _forward_impl(self, state_gcn, state_spec, adj, param_slab):
        B, N, Dg = state_gcn.shape
        Ds = state_spec.shape[-1]
        lanes = self.lanes
        d = self.out_dim
        assert N <= lanes, "adjacency must fit in the lane-padded activation slab"
        n_pad = _round_up(N, _SUBLANES)

        # one lane-padded activation slab per state: [adj | x | spec] -> single input DMA per step
        adj_blk = jnp.pad(adj, ((0, 0), (0, n_pad - N), (0, lanes - N)))
        x_blk = jnp.pad(state_gcn, ((0, 0), (0, n_pad - N), (0, lanes - Dg)))
        s_blk = jnp.pad(state_spec[:, None, :], ((0, 0), (0, _SUBLANES - 1), (0, lanes - Ds)))
        in_slab = jnp.concatenate([adj_blk, x_blk, s_blk], axis=1)                 # [B, R_in, lanes]
        r_in = int(in_slab.shape[1])
        spec_row = 2 * n_pad

        layout = self.param_layout
        rp = int(param_slab.shape[0])

        def kernel(in_ref, p_ref, out_ref):
            def getw(name):
                r0, nr = layout[name]
                return p_ref[r0:r0 + nr, :]                  # static, full-lane, unmasked load

            dot = functools.partial(jnp.dot, preferred_element_type=jnp.float32)
            relu = lambda v: jnp.maximum(v, 0.0)

            adj_t = in_ref[0, 0:N, 0:N]                      # [N, N]
            x_t = in_ref[0, n_pad:n_pad + N, :]              # [N, lanes] (lanes >= Dg are zero)
            spec_t = in_ref[0, spec_row:spec_row + 1, :]     # [1, lanes]

            br0, _ = layout["bias"]
            bg1 = p_ref[br0 + 0:br0 + 1, :]
            bg2 = p_ref[br0 + 1:br0 + 2, :]
            bs = p_ref[br0 + 2:br0 + 3, :]
            b2 = p_ref[br0 + 3:br0 + 4, :]
            b3 = p_ref[br0 + 4:br0 + 5, :]

            # shared parameter-independent term
            ax = dot(adj_t, x_t)                                              # [N, lanes]
            # fused actor||critic GCN stack (block-diagonal weights keep branches independent)
            h1 = relu(dot(ax, getw("wg1")) + bg1)                             # [N, lanes]
            h2 = relu(dot(dot(adj_t, h1), getw("wg2")) + bg2)                 # [N, lanes]
            pooled = jnp.mean(h2, axis=0, keepdims=True)                      # [1, lanes], lanes 0..2H-1
            s = relu(dot(spec_t, getw("ws")) + bs)                            # [1, lanes], lanes 2H..4H-1
            # single fused head matmul: pooled in lower lanes, s in upper lanes, W2 = [w2p ; w2s]
            z = relu(dot(pooled + s, getw("w2")) + b2)                        # [1, lanes]
            head = dot(z, getw("w3")) + b3                                    # [1, lanes]

            logits = head[:, 0:d]                                             # actor logits
            value = head[:, d:d + 1]                                          # critic value
            m = jnp.max(logits, axis=-1, keepdims=True)
            e = jnp.exp(logits - m)
            probs = e / jnp.sum(e, axis=-1, keepdims=True)                    # exact normalization

            # build the whole output tile in registers; exactly ONE dense [8, lanes] store
            row = jnp.concatenate(
                [probs, logits, value,
                 jnp.zeros((1, lanes - (2 * d + 1)), jnp.float32)], axis=-1)
            tile = jnp.concatenate(
                [row, jnp.zeros((_SUBLANES - 1, lanes), jnp.float32)], axis=0)
            out_ref[0] = tile

        out = pl.pallas_call(
            kernel,
            out_shape=jax.ShapeDtypeStruct((B, _SUBLANES, lanes), jnp.float32),
            grid=(B,),
            in_specs=[
                pl.BlockSpec((1, r_in, lanes), lambda b: (b, 0, 0)),   # per-state activations (pipelined)
                pl.BlockSpec((rp, lanes), lambda b: (0, 0)),           # param slab: resident across grid
            ],
            out_specs=pl.BlockSpec((1, _SUBLANES, lanes), lambda b: (b, 0, 0)),
            compiler_params=pltpu.CompilerParams(dimension_semantics=("parallel",)),
        )(in_slab, param_slab)

        probs = out[:, 0, 0:d]
        logits = out[:, 0, d:2 * d]
        value = out[:, 0, 2 * d:2 * d + 1]
        return probs, logits, value

    # ------------------------------------------------------------------- public API
    def forward_batch(self, state_gcn, state_spec, adj):
        """Batched actor+critic forward: ([B,N,Dg], [B,Ds], [B,N,N]) -> (probs, logits, value)."""
        state_gcn = jnp.asarray(state_gcn, jnp.float32)
        state_spec = jnp.asarray(state_spec, jnp.float32)
        adj = jnp.asarray(adj, jnp.float32)
        return self._forward(state_gcn, state_spec, adj, self.param_slab)

    def act(self, state_gcn, state_spec, adj, sample_key):
        """Mirrors ActorCritic.act: action_probs -> Categorical sample (sampled from logits)."""
        sg = jnp.asarray(state_gcn, jnp.float32)[None]
        ss = jnp.asarray(state_spec, jnp.float32).reshape(1, -1)
        ad = jnp.asarray(adj, jnp.float32)[None]
        probs, logits, value = self._forward(sg, ss, ad, self.param_slab)
        action = jax.random.categorical(sample_key, logits, axis=-1)
        return action[0], probs, value


# ----------------------------------------------------------------------------- main
if __name__ == "__main__":
    N_NODES = 8          # graph nodes
    IN_DIM_GCN = 4       # per-node feature dim
    IN_DIM_SPEC = 8      # spec (flat state) feature dim
    N_LATENT = 32        # hidden width
    OUT_DIM = 8          # number of discrete actions
    BATCH = 4            # batch of env states (grid dimension)

    model = ActorCriticPallas(IN_DIM_GCN, IN_DIM_SPEC, N_LATENT, OUT_DIM, seed=0)

    key = jax.random.PRNGKey(0)
    k_sg, k_ss, k_adj, k_sample = jax.random.split(key, 4)
    state_gcn = jax.random.normal(k_sg, (BATCH, N_NODES, IN_DIM_GCN), jnp.float32)
    state_spec = jax.random.normal(k_ss, (BATCH, IN_DIM_SPEC), jnp.float32)
    # symmetric row-normalized adjacency with self loops (per batch element)
    a = (jax.random.uniform(k_adj, (BATCH, N_NODES, N_NODES)) > 0.5).astype(jnp.float32)
    a = jnp.maximum(a, jnp.transpose(a, (0, 2, 1))) + jnp.eye(N_NODES, dtype=jnp.float32)[None]
    adj = a / jnp.sum(a, axis=-1, keepdims=True)

    probs, logits, value = model.forward_batch(state_gcn, state_spec, adj)
    jax.block_until_ready((probs, logits, value))

    # parity against an unfused pure-JAX reference of the same architecture
    for b in range(BATCH):
        spec2d = state_spec[b:b + 1]
        ref_logits = _reference_branch(model.actor_params, state_gcn[b], spec2d, adj[b])
        ref_probs = jax.nn.softmax(ref_logits, axis=-1)
        ref_value = _reference_branch(model.critic_params, state_gcn[b], spec2d, adj[b])
        assert bool(jnp.allclose(logits[b], ref_logits[0], rtol=5e-3, atol=1e-4))
        assert bool(jnp.allclose(probs[b], ref_probs[0], rtol=5e-3, atol=1e-4))
        assert bool(jnp.allclose(value[b], ref_value[0], rtol=5e-3, atol=1e-4))
    assert bool(jnp.allclose(jnp.sum(probs, axis=-1), 1.0, atol=1e-4))
    assert probs.shape == (BATCH, OUT_DIM) and value.shape == (BATCH, 1)

    # single-state act() path (mirrors the original PyTorch interface; B=1 grid)
    action, p1, v1 = model.act(state_gcn[0], state_spec[0], adj[0], k_sample)
    jax.block_until_ready((action, p1, v1))
    assert p1.shape == (1, OUT_DIM) and v1.shape == (1, 1)
    assert 0 <= int(action) < OUT_DIM

    print("KERNEL_OK")
</pallas_src>

<mosaic_0001>
module attributes {stable_mosaic.version = 11 : i64} {
  func.func @kernel(%arg0: i32, %arg1: memref<1x24x128xf32, #tpu.memory_space<vmem>>, %arg2: memref<648x128xf32, #tpu.memory_space<vmem>>, %arg3: memref<1x8x128xf32, #tpu.memory_space<vmem>>) attributes {dimension_semantics = [#tpu.dimension_semantics<parallel>], iteration_bounds = array<i64: 4>, scalar_prefetch = 0 : i64, scratch_operands = 0 : i64, tpu.core_type = #tpu.core_type<tc>, window_params = [{transform_indices = @transform_0, window_bounds = array<i64: 1, 24, 128>}, {pipeline_mode = #tpu.pipeline_mode<synchronous>, transform_indices = @transform_1, window_bounds = array<i64: 648, 128>}, {transform_indices = @transform_2, window_bounds = array<i64: 1, 8, 128>}]} {
    %c0 = arith.constant 0 : index
    %c0_0 = arith.constant 0 : index
    %c0_1 = arith.constant 0 : index
    %0 = vector.load %arg1[%c0, %c0_0, %c0_1] : memref<1x24x128xf32, #tpu.memory_space<vmem>>, vector<1x8x8xf32>
    %1 = vector.shape_cast %0 : vector<1x8x8xf32> to vector<8x8xf32>
    %c0_2 = arith.constant 0 : index
    %c8 = arith.constant 8 : index
    %c0_3 = arith.constant 0 : index
    %2 = vector.load %arg1[%c0_2, %c8, %c0_3] : memref<1x24x128xf32, #tpu.memory_space<vmem>>, vector<1x8x128xf32>
    %3 = vector.shape_cast %2 : vector<1x8x128xf32> to vector<8x128xf32>
    %c0_4 = arith.constant 0 : index
    %c16 = arith.constant 16 : index
    %c0_5 = arith.constant 0 : index
    %4 = vector.load %arg1[%c0_4, %c16, %c0_5] : memref<1x24x128xf32, #tpu.memory_space<vmem>>, vector<1x1x128xf32>
    %5 = vector.shape_cast %4 : vector<1x1x128xf32> to vector<1x128xf32>
    %c0_6 = arith.constant 0 : index
    %c0_7 = arith.constant 0 : index
    %6 = vector.load %arg2[%c0_6, %c0_7] : memref<648x128xf32, #tpu.memory_space<vmem>>, vector<1x128xf32>
    %c1 = arith.constant 1 : index
    %c0_8 = arith.constant 0 : index
    %7 = vector.load %arg2[%c1, %c0_8] : memref<648x128xf32, #tpu.memory_space<vmem>>, vector<1x128xf32>
    %c2 = arith.constant 2 : index
    %c0_9 = arith.constant 0 : index
    %8 = vector.load %arg2[%c2, %c0_9] : memref<648x128xf32, #tpu.memory_space<vmem>>, vector<1x128xf32>
    %c3 = arith.constant 3 : index
    %c0_10 = arith.constant 0 : index
    %9 = vector.load %arg2[%c3, %c0_10] : memref<648x128xf32, #tpu.memory_space<vmem>>, vector<1x128xf32>
    %c4 = arith.constant 4 : index
    %c0_11 = arith.constant 0 : index
    %10 = vector.load %arg2[%c4, %c0_11] : memref<648x128xf32, #tpu.memory_space<vmem>>, vector<1x128xf32>
    %cst = arith.constant dense<0.000000e+00> : vector<8x128xf32>
    %11 = tpu.matmul %1, %3, %cst {dimension_numbers = #tpu.dot_dimension_numbers<[1], [0], [0], [1], [0, 0, 1, 1], [], []>} : vector<8x8xf32>, vector<8x128xf32>, vector<8x128xf32> -> vector<8x128xf32>
    %c8_12 = arith.constant 8 : index
    %c0_13 = arith.constant 0 : index
    %12 = vector.load %arg2[%c8_12, %c0_13] : memref<648x128xf32, #tpu.memory_space<vmem>>, vector<128x128xf32>
    %cst_14 = arith.constant dense<0.000000e+00> : vector<8x128xf32>
    %13 = tpu.matmul %11, %12, %cst_14 {dimension_numbers = #tpu.dot_dimension_numbers<[1], [0], [0], [1], [0, 0, 1, 1], [], []>} : vector<8x128xf32>, vector<128x128xf32>, vector<8x128xf32> -> vector<8x128xf32>
    %14 = vector.broadcast %6 : vector<1x128xf32> to vector<8x128xf32>
    %15 = arith.addf %13, %14 : vector<8x128xf32>
    %cst_15 = arith.constant 0.000000e+00 : f32
    %16 = vector.broadcast %cst_15 : f32 to vector<8x128xf32>
    %17 = arith.maximumf %15, %16 : vector<8x128xf32>
    %cst_16 = arith.constant dense<0.000000e+00> : vector<8x128xf32>
    %18 = tpu.matmul %1, %17, %cst_16 {dimension_numbers = #tpu.dot_dimension_numbers<[1], [0], [0], [1], [0, 0, 1, 1], [], []>} : vector<8x8xf32>, vector<8x128xf32>, vector<8x128xf32> -> vector<8x128xf32>
    %c136 = arith.constant 136 : index
    %c0_17 = arith.constant 0 : index
    %19 = vector.load %arg2[%c136, %c0_17] : memref<648x128xf32, #tpu.memory_space<vmem>>, vector<128x128xf32>
    %cst_18 = arith.constant dense<0.000000e+00> : vector<8x128xf32>
    %20 = tpu.matmul %18, %19, %cst_18 {dimension_numbers = #tpu.dot_dimension_numbers<[1], [0], [0], [1], [0, 0, 1, 1], [], []>} : vector<8x128xf32>, vector<128x128xf32>, vector<8x128xf32> -> vector<8x128xf32>
    %21 = vector.broadcast %7 : vector<1x128xf32> to vector<8x128xf32>
    %22 = arith.addf %20, %21 : vector<8x128xf32>
    %cst_19 = arith.constant 0.000000e+00 : f32
    %23 = vector.broadcast %cst_19 : f32 to vector<8x128xf32>
    %24 = arith.maximumf %22, %23 : vector<8x128xf32>
    %cst_20 = arith.constant dense<0.000000e+00> : vector<128xf32>
    %25 = vector.multi_reduction <add>, %24, %cst_20 [0] : vector<8x128xf32> to vector<128xf32>
    %26 = vector.shape_cast %25 : vector<128xf32> to vector<1x128xf32>
    %cst_21 = arith.constant 8.000000e+00 : f32
    %27 = vector.broadcast %cst_21 : f32 to vector<1x128xf32>
    %28 = arith.divf %26, %27 : vector<1x128xf32>
    %c264 = arith.constant 264 : index
    %c0_22 = arith.constant 0 : index
    %29 = vector.load %arg2[%c264, %c0_22] : memref<648x128xf32, #tpu.memory_space<vmem>>, vector<128x128xf32>
    %cst_23 = arith.constant dense<0.000000e+00> : vector<1x128xf32>
    %30 = tpu.matmul %5, %29, %cst_23 {dimension_numbers = #tpu.dot_dimension_numbers<[1], [0], [0], [1], [0, 0, 1, 1], [], []>} : vector<1x128xf32>, vector<128x128xf32>, vector<1x128xf32> -> vector<1x128xf32>
    %31 = arith.addf %30, %8 : vector<1x128xf32>
    %cst_24 = arith.constant 0.000000e+00 : f32
    %32 = vector.broadcast %cst_24 : f32 to vector<1x128xf32>
    %33 = arith.maximumf %31, %32 : vector<1x128xf32>
    %34 = arith.addf %28, %33 : vector<1x128xf32>
    %c392 = arith.constant 392 : index
    %c0_25 = arith.constant 0 : index
    %35 = vector.load %arg2[%c392, %c0_25] : memref<648x128xf32, #tpu.memory_space<vmem>>, vector<128x128xf32>
    %cst_26 = arith.constant dense<0.000000e+00> : vector<1x128xf32>
    %36 = tpu.matmul %34, %35, %cst_26 {dimension_numbers = #tpu.dot_dimension_numbers<[1], [0], [0], [1], [0, 0, 1, 1], [], []>} : vector<1x128xf32>, vector<128x128xf32>, vector<1x128xf32> -> vector<1x128xf32>
    %37 = arith.addf %36, %9 : vector<1x128xf32>
    %cst_27 = arith.constant 0.000000e+00 : f32
    %38 = vector.broadcast %cst_27 : f32 to vector<1x128xf32>
    %39 = arith.maximumf %37, %38 : vector<1x128xf32>
    %c520 = arith.constant 520 : index
    %c0_28 = arith.constant 0 : index
    %40 = vector.load %arg2[%c520, %c0_28] : memref<648x128xf32, #tpu.memory_space<vmem>>, vector<128x128xf32>
    %cst_29 = arith.constant dense<0.000000e+00> : vector<1x128xf32>
    %41 = tpu.matmul %39, %40, %cst_29 {dimension_numbers = #tpu.dot_dimension_numbers<[1], [0], [0], [1], [0, 0, 1, 1], [], []>} : vector<1x128xf32>, vector<128x128xf32>, vector<1x128xf32> -> vector<1x128xf32>
    %42 = arith.addf %41, %10 : vector<1x128xf32>
    %43 = vector.extract_strided_slice %42 {offsets = [0, 0], sizes = [1, 8], strides = [1, 1]} : vector<1x128xf32> to vector<1x8xf32>
    %44 = vector.extract_strided_slice %42 {offsets = [0, 8], sizes = [1, 1], strides = [1, 1]} : vector<1x128xf32> to vector<1x1xf32>
    %cst_30 = arith.constant dense<0xFF800000> : vector<1xf32>
    %45 = vector.multi_reduction <maximumf>, %43, %cst_30 [1] : vector<1x8xf32> to vector<1xf32>
    %46 = vector.shape_cast %45 : vector<1xf32> to vector<1x1xf32>
    %47 = vector.broadcast %46 : vector<1x1xf32> to vector<1x8xf32>
    %48 = arith.subf %43, %47 : vector<1x8xf32>
    %49 = math.exp %48 : vector<1x8xf32>
    %cst_31 = arith.constant dense<0.000000e+00> : vector<1xf32>
    %50 = vector.multi_reduction <add>, %49, %cst_31 [1] : vector<1x8xf32> to vector<1xf32>
    %51 = vector.shape_cast %50 : vector<1xf32> to vector<1x1xf32>
    %52 = vector.broadcast %51 : vector<1x1xf32> to vector<1x8xf32>
    %53 = arith.divf %49, %52 : vector<1x8xf32>
    %cst_32 = arith.constant 0.000000e+00 : f32
    %54 = vector.broadcast %cst_32 : f32 to vector<1x111xf32>
    %55 = tpu.concatenate %53, %43, %44, %54 in 1 : vector<1x8xf32>, vector<1x8xf32>, vector<1x1xf32>, vector<1x111xf32> -> vector<1x128xf32>
    %cst_33 = arith.constant 0.000000e+00 : f32
    %56 = vector.broadcast %cst_33 : f32 to vector<7x128xf32>
    %57 = tpu.concatenate %55, %56 in 0 : vector<1x128xf32>, vector<7x128xf32> -> vector<8x128xf32>
    %c0_34 = arith.constant 0 : index
    %c0_35 = arith.constant 0 : index
    %c0_36 = arith.constant 0 : index
    %58 = vector.load %arg3[%c0_34, %c0_35, %c0_36] : memref<1x8x128xf32, #tpu.memory_space<vmem>>, vector<1x8x128xf32>
    %59 = vector.shape_cast %58 : vector<1x8x128xf32> to vector<8x128xf32>
    %60 = vector.shape_cast %57 : vector<8x128xf32> to vector<1x8x128xf32>
    tpu.vector_store %arg3[%c0_34, %c0_35, %c0_36], %60 {strides = array<i32>} : memref<1x8x128xf32, #tpu.memory_space<vmem>>, vector<1x8x128xf32>,
    return
  }
  func.func @transform_0(%arg0: i32) -> (i32, i32, i32) {
    %c0_i32 = arith.constant 0 : i32
    %c0_i32_0 = arith.constant 0 : i32
    %c0_i32_1 = arith.constant 0 : i32
    return %arg0, %c0_i32, %c0_i32_0 : i32, i32, i32
  }
  func.func @transform_1(%arg0: i32) -> (i32, i32) {
    %c0_i32 = arith.constant 0 : i32
    %c0_i32_0 = arith.constant 0 : i32
    %c0_i32_1 = arith.constant 0 : i32
    return %c0_i32, %c0_i32_0 : i32, i32
  }
  func.func @transform_2(%arg0: i32) -> (i32, i32, i32) {
    %c0_i32 = arith.constant 0 : i32
    %c0_i32_0 = arith.constant 0 : i32
    %c0_i32_1 = arith.constant 0 : i32
    return %arg0, %c0_i32, %c0_i32_0 : i32, i32, i32
  }
}

</mosaic_0001>

<bundles_post_ra>
// kernel: _forward_impl.1
= control target key start
LH: loop header
LB: loop body
LE: loop exit
PB: predicated region body
PF: predicated region fallthrough
CT: control target
= control target key end

     0   :  { %7 = vsyncpa [#allocation3], 0  ;;  %s1226_s9 = smov 0   ;;  %s1380_s0 = inlined_call_operand.vmem [shape: f32[4,24,128], index: 0, kind: input, shape index: {}]   ;;  %s1381_s1 = inlined_call_operand.hbm [shape: f32[648,128], index: 1, kind: input, shape index: {}]   ;;  %s1382_s2 = inlined_call_operand.vmem [shape: f32[4,8,128], index: 2, kind: output, shape index: {}]  }
   0x1 LB: > { %s1232_s10 = sadd.s32 4294967295, %s1203_s9   ;;  %p851_p0 = scmp.ge.s32.totalorder %s1203_s9, 1  ;;  %s1203_s9 = sphi %s1226_s9, %s13_s9  }
   0x2   : > { %p91_p1 = scmp.lt.s32.totalorder %s1203_s9, 5  ;;  %s1205_s11 = smov [#allocation2]  }
   0x3   : > { %s103_s12 = sshll.u32 %s1205_s11, 4  ;;  %p1147_p3 = scmp.eq.s32.totalorder %s1232_s10, 0  ;;  %s104_s12 = int_to_ptr.vmem [resolvable:$true] %s103_s12 }
   0x4   : > { %p1236_p2 = pnand %p851_p0, %p91_p1  ;;  %s1178_s14 = scalar_lea.vmem %s104_s12, 10368 }
   0x5   : > { %p1179_p7 = scmp.ne.s32.totalorder %s104_s12, %s1178_s14  ;;  %p1186_p10 = scmp.lt.s32.totalorder %s104_s12, %s104_s12 }
   0x6   : > { %p1143_p4 = pneg %p1236_p2  ;;  %p1187_p11 = scmp.lt.s32.totalorder %s1178_s14, %s1178_s14 }
   0x8   : > { %p1144_p5 = pnand %p1147_p3, %p1143_p4  ;;  %p1188_p12 = por %p1187_p11, %p1186_p10 }
   0xa   : > { %p1169_p6 = pneg %p1144_p5 }
   0xc   : > { %p1181_p8 = pnand %p1179_p7, %p1169_p6 }
   0xe   : > { %p1182_p9 = pneg %p1181_p8 }
  0x10   : > { %p1189_p13 = pnand %p1188_p12, %p1182_p9 }
  0x12   : > { %1192 = shalt.err (!%p1189_p13)
}
  0x13   : > { %s1206_s15 = smov 128   ;;  %s1207_s16 = smov 8  }
  0x14   : > { %1146 = dma.hbm_to_vmem [thread:$0]  (!%p1144_p5), %s1381_s1, 10368, %s104_s12, [#allocation3], %s1206_s15, %s1206_s15, %s1207_s16  }
  0x15   : > { %127 = sbr.rel (%p1236_p2) target bundleno = 1541 (0x605), region = 28 }
  0x1a   : > { %1198 = dma.done.wait (%p1147_p3), [#allocation3], 10368  }
  0x1b   : > { %1200 = vsyncadd (%p1147_p3), [#allocation3], 4294956928  ;;  %p148_p0 = scmp.lt.s32.totalorder %s1232_s10, 3  ;;  %v1208_v0 = vmov 0.0   ;;  %vm1209_vm0 = vmmov 0   ;;  %vm165_vm1 = vcmask 64512  }
  0x1c   : > { %953 = vmatprep.subr.mxu0 %v1208_v0  ;;  %955 = vmatprep.mubr.msk.f32.mxu0 %vm1209_vm0, %v1208_v0  ;;  %v254_v3 = vld [vmem:[#allocation2 + $0x80] sm:$0xff]  ;;  %v253_v4 = vld [vmem:[#allocation2 + $0x78] sm:$0xff]  ;;  %v252_v5 = vld [vmem:[#allocation2 + $0x70] sm:$0xff]  ;;  %vm760_vm2 = vcmask 57344   ;;  %s1210_s23 = smov 8   ;;  %vm777_vm3 = vcmask 130048  }
  0x1d   : > { %s1385_s10 = smov (!%p148_p0, %s1232_s10), 3  ;;  %958 = vmatprep.subr.mxu1 %v1208_v0  ;;  %990 = vmatprep.mubr.msk.f32.mxu1 %vm1209_vm0, %v1208_v0  ;;  %v251_v6 = vld [vmem:[#allocation2 + $0x68] sm:$0xff]  ;;  %v250_v7 = vld [vmem:[#allocation2 + $0x60] sm:$0xff]  ;;  %v249_v8 = vld [vmem:[#allocation2 + $0x58] sm:$0xff]  ;;  %vm779_vm4 = vcmask 138240   ;;  %vm781_vm5 = vcmask 1040384  }
  0x1e   : > { %s1138_s19 = smul.u32 24, %s1385_s10  ;;  %959 = vmatpush3.msra.mxu1 %v254_v3  ;;  %v248_v9 = vld [vmem:[#allocation2 + $0x50] sm:$0xff]  ;;  %v247_v10 = vld [vmem:[#allocation2 + $0x48] sm:$0xff]  ;;  %v246_v11 = vld [vmem:[#allocation2 + $0x40] sm:$0xff]  ;;  %s857_s24 = sshll.u32 %s1385_s10, 3 }
  0x1f   : > { %960 = vmatprep.subr.mxu1 %v1208_v0  ;;  %v245_v12 = vld [vmem:[#allocation2 + $0x38] sm:$0xff]  ;;  %v244_v13 = vld [vmem:[#allocation2 + $0x30] sm:$0xff]  ;;  %v243_v14 = vld [vmem:[#allocation2 + $0x28] sm:$0xff]  ;;  %s156_s27 = scalar_lea.vmem %s1382_s2, %s857_s24 }
  0x20   : > { %s1268_s22 = scalar_lea.vmem %s1380_s0, %s1138_s19  ;;  %961 = vmatpush3.msra.mxu1 %v253_v4  ;;  %v242_v15 = vld [vmem:[#allocation2 + $0x20] sm:$0xff]  ;;  %v241_v16 = vld [vmem:[#allocation2 + $0x18] sm:$0xff]  ;;  %v240_v17 = vld [vmem:[#allocation2 + $0x10] sm:$0xff] }
  0x21   : > { %v158_v1 = vld [vmem:[%s1268_s22 + $0x8] sm:$0xff]  ;;  %v1272_v2 = vld [vmem:[%s1268_s22] sm:$0xff]  ;;  %962 = vmatprep.subr.mxu1 %v1208_v0  ;;  %v513_v22 = vld [vmem:[#allocation2 + $0x178] sm:$0xff] }
  0x22   : > { %954 = vmatpush3.msra.mxu0 %v158_v1  ;;  %963 = vmatpush3.msra.mxu1 %v252_v5  ;;  %v239_v18 = vld [vmem:[#allocation2 + $0x8] sm:$0xff]  ;;  %v514_v21 = vld [vmem:[#allocation2 + $0x180] sm:$0xff]  ;;  %v512_v23 = vld [vmem:[#allocation2 + $0x170] sm:$0xff] }
  0x23   : > { %956 = vmatmul.mubr.msk.f32.vlgmr.msra.gmra.mxu0 %vm165_vm1, %v1272_v2  ;;  %993 = vmatprep.subr.mxu0 %v1208_v0  ;;  %v511_v24 = vld [vmem:[#allocation2 + $0x168] sm:$0xff]  ;;  %v510_v25 = vld [vmem:[#allocation2 + $0x160] sm:$0xff]  ;;  %v509_v26 = vld [vmem:[#allocation2 + $0x158] sm:$0xff] }
  0x24   : > { %995 = vmatprep.mubr.msk.f32.mxu0 %vm1209_vm0, %v1208_v0  ;;  %964 = vmatprep.subr.mxu1 %v1208_v0  ;;  %v508_v27 = vld [vmem:[#allocation2 + $0x150] sm:$0xff]  ;;  %v507_v28 = vld [vmem:[#allocation2 + $0x148] sm:$0xff]  ;;  %v859_v29 = vld [vmem:[#allocation2] ss:$0 sm:$0xff] }
  0x25   : > { %965 = vmatpush3.msra.mxu1 %v251_v6  ;;  %v415_v34 = vld [vmem:[#allocation2 + $0x100] sm:$0xff]  ;;  %v414_v35 = vld [vmem:[#allocation2 + $0xf8] sm:$0xff]  ;;  %v413_v36 = vld [vmem:[#allocation2 + $0xf0] sm:$0xff] }
  0x26   : > { %966 = vmatprep.subr.mxu1 %v1208_v0  ;;  %v412_v37 = vld [vmem:[#allocation2 + $0xe8] sm:$0xff]  ;;  %v411_v38 = vld [vmem:[#allocation2 + $0xe0] sm:$0xff]  ;;  %v410_v39 = vld [vmem:[#allocation2 + $0xd8] sm:$0xff] }
  0x27   : > { %967 = vmatpush3.msra.mxu1 %v250_v7  ;;  %v409_v40 = vld [vmem:[#allocation2 + $0xd0] sm:$0xff]  ;;  %v408_v41 = vld [vmem:[#allocation2 + $0xc8] sm:$0xff]  ;;  %v407_v42 = vld [vmem:[#allocation2 + $0xc0] sm:$0xff] }
  0x28   : > { %968 = vmatprep.subr.mxu1 %v1208_v0  ;;  %v406_v43 = vld [vmem:[#allocation2 + $0xb8] sm:$0xff]  ;;  %v405_v44 = vld [vmem:[#allocation2 + $0xb0] sm:$0xff]  ;;  %v404_v45 = vld [vmem:[#allocation2 + $0xa8] sm:$0xff] }
  0x29   : > { %969 = vmatpush3.msra.mxu1 %v249_v8  ;;  %v403_v46 = vld [vmem:[#allocation2 + $0xa0] sm:$0xff]  ;;  %v402_v47 = vld [vmem:[#allocation2 + $0x98] sm:$0xff]  ;;  %v401_v48 = vld [vmem:[#allocation2 + $0x90] sm:$0xff] }
  0x2a   : > { %970 = vmatprep.subr.mxu1 %v1208_v0  ;;  %v506_v49 = vld [vmem:[#allocation2 + $0x140] sm:$0xff]  ;;  %v400_v50 = vld [vmem:[#allocation2 + $0x88] sm:$0xff]  ;;  %v505_v51 = vld [vmem:[#allocation2 + $0x138] sm:$0xff] }
  0x2b   : > { %971 = vmatpush3.msra.mxu1 %v248_v9  ;;  %v504_v52 = vld [vmem:[#allocation2 + $0x130] sm:$0xff]  ;;  %v503_v53 = vld [vmem:[#allocation2 + $0x128] sm:$0xff]  ;;  %v502_v54 = vld [vmem:[#allocation2 + $0x120] sm:$0xff] }
  0x2c   : > { %972 = vmatprep.subr.mxu1 %v1208_v0  ;;  %v501_v55 = vld [vmem:[#allocation2 + $0x118] sm:$0xff]  ;;  %v500_v56 = vld [vmem:[#allocation2 + $0x110] sm:$0xff]  ;;  %v499_v57 = vld [vmem:[#allocation2 + $0x108] sm:$0xff] }
  0x2d   : > { %973 = vmatpush3.msra.mxu1 %v247_v10  ;;  %v159_v58 = vld [vmem:[%s1268_s22 + $0x10] sm:$0x1]  ;;  %v602_v59 = vld [vmem:[#allocation2 + $0x200] sm:$0xff]  ;;  %v601_v61 = vld [vmem:[#allocation2 + $0x1f8] sm:$0xff] }
  0x2e   : > { %974 = vmatprep.subr.mxu1 %v1208_v0  ;;  %v600_v63 = vld [vmem:[#allocation2 + $0x1f0] sm:$0xff]  ;;  %v599_v1 = vld [vmem:[#allocation2 + $0x1e8] sm:$0xff]  ;;  %v597_v3 = vld [vmem:[#allocation2 + $0x1d8] sm:$0xff] }
  0x2f   : > { %975 = vmatpush3.msra.mxu1 %v246_v11  ;;  %v596_v4 = vld [vmem:[#allocation2 + $0x1d0] sm:$0xff]  ;;  %v595_v5 = vld [vmem:[#allocation2 + $0x1c8] sm:$0xff]  ;;  %v594_v6 = vld [vmem:[#allocation2 + $0x1c0] sm:$0xff] }
  0x30   : > { %976 = vmatprep.subr.mxu1 %v1208_v0  ;;  %v593_v7 = vld [vmem:[#allocation2 + $0x1b8] sm:$0xff]  ;;  %v592_v8 = vld [vmem:[#allocation2 + $0x1b0] sm:$0xff]  ;;  %v591_v9 = vld [vmem:[#allocation2 + $0x1a8] sm:$0xff] }
  0x31   : > { %977 = vmatpush3.msra.mxu1 %v245_v12  ;;  %v590_v11 = vld [vmem:[#allocation2 + $0x1a0] sm:$0xff] }
  0x32   : > { %978 = vmatprep.subr.mxu1 %v1208_v0 }
  0x33   : > { %979 = vmatpush3.msra.mxu1 %v244_v13  ;;  %v589_v13 = vld [vmem:[#allocation2 + $0x198] sm:$0xff] }
  0x34   : > { %980 = vmatprep.subr.mxu1 %v1208_v0 }
  0x35   : > { %981 = vmatpush3.msra.mxu1 %v243_v14  ;;  %v588_v14 = vld [vmem:[#allocation2 + $0x190] sm:$0xff] }
  0x36   : > { %982 = vmatprep.subr.mxu1 %v1208_v0 }
  0x37   : > { %983 = vmatpush3.msra.mxu1 %v242_v15  ;;  %v587_v15 = vld [vmem:[#allocation2 + $0x188] sm:$0xff] }
  0x38   : > { %984 = vmatprep.subr.mxu1 %v1208_v0 }
  0x39   : > { %985 = vmatpush3.msra.mxu1 %v241_v16  ;;  %v689_v16 = vld [vmem:[#allocation2 + $0x280] sm:$0xff] }
  0x3a   : > { %986 = vmatprep.subr.mxu1 %v1208_v0 }
  0x3b   : > { %987 = vmatpush3.msra.mxu1 %v240_v17  ;;  %v688_v17 = vld [vmem:[#allocation2 + $0x278] sm:$0xff] }
  0x3c   : > { %988 = vmatprep.subr.mxu1 %v1208_v0 }
  0x3d   : > { %989 = vmatpush3.msra.mxu1 %v239_v18  ;;  %v687_v18 = vld [vmem:[#allocation2 + $0x270] sm:$0xff] }
  0x3e   : > { %1033 = vmatprep.subr.mxu1 %v1208_v0 }
  0xe3   : > { %v235_v19 = vpop.f32.mrf.mxu0 }
  0xe4   : > { %991 = vmatmul.mubr.f32.vlgmr.msra.gmra.mxu1 %v235_v19  ;;  %v686_v19 = vld [vmem:[#allocation2 + $0x268] sm:$0xff] }
  0xe5   : > { %v957_v20 = vpop.f32.mrf.mxu0  ;;  %1065 = vmatprep.mubr.msk.f32.mxu1 %vm1209_vm0, %v1208_v0  ;;  %1034 = vmatpush3.msra.mxu1 %v514_v21  ;;  %v684_v21 = vld [vmem:[#allocation2 + $0x258] sm:$0xff] }
  0xe6   : > { %1035 = vmatprep.subr.mxu1 %v1208_v0  ;;  %v685_v20 = vld [vmem:[#allocation2 + $0x260] sm:$0xff] }
  0xe7   : > { %1036 = vmatpush3.msra.mxu1 %v513_v22  ;;  %v683_v22 = vld [vmem:[#allocation2 + $0x250] sm:$0xff] }
  0xe8   : > { %1037 = vmatprep.subr.mxu1 %v1208_v0 }
  0xe9   : > { %1038 = vmatpush3.msra.mxu1 %v512_v23  ;;  %v682_v23 = vld [vmem:[#allocation2 + $0x248] sm:$0xff] }
  0xea   : > { %1039 = vmatprep.subr.mxu1 %v1208_v0 }
  0xeb   : > { %1040 = vmatpush3.msra.mxu1 %v511_v24  ;;  %v681_v24 = vld [vmem:[#allocation2 + $0x240] sm:$0xff] }
  0xec   : > { %1041 = vmatprep.subr.mxu1 %v1208_v0 }
  0xed   : > { %1042 = vmatpush3.msra.mxu1 %v510_v25  ;;  %v680_v25 = vld [vmem:[#allocation2 + $0x238] sm:$0xff] }
  0xee   : > { %1043 = vmatprep.subr.mxu1 %v1208_v0 }
  0xef   : > { %1044 = vmatpush3.msra.mxu1 %v509_v26  ;;  %v679_v26 = vld [vmem:[#allocation2 + $0x230] sm:$0xff] }
  0xf0   : > { %1045 = vmatprep.subr.mxu1 %v1208_v0 }
  0xf1   : > { %1046 = vmatpush3.msra.mxu1 %v508_v27  ;;  %v678_v27 = vld [vmem:[#allocation2 + $0x228] sm:$0xff] }
  0xf2   : > { %1047 = vmatprep.subr.mxu1 %v1208_v0 }
  0xf3   : > { %1048 = vmatpush3.msra.mxu1 %v507_v28  ;;  %v677_v28 = vld [vmem:[#allocation2 + $0x220] sm:$0xff] }
  0xf4   : > { %1049 = vmatprep.subr.mxu1 %v1208_v0 }
  0xf5   : > { %1050 = vmatpush3.msra.mxu1 %v506_v49 }
  0xf6   : > { %1051 = vmatprep.subr.mxu1 %v1208_v0 }
  0xf7   : > { %1052 = vmatpush3.msra.mxu1 %v505_v51 }
  0xf8   : > { %1053 = vmatprep.subr.mxu1 %v1208_v0 }
  0xf9   : > { %1054 = vmatpush3.msra.mxu1 %v504_v52 }
  0xfa   : > { %1055 = vmatprep.subr.mxu1 %v1208_v0 }
  0xfb   : > { %1056 = vmatpush3.msra.mxu1 %v503_v53  ;;  %v164_v53 = vld [vmem:[#allocation2 + $0x4] sm:$0x1] }
  0xfc   : > { %1057 = vmatprep.subr.mxu1 %v1208_v0 }
  0xfd   : > { %1058 = vmatpush3.msra.mxu1 %v502_v54 }
  0xfe   : > { %1059 = vmatprep.subr.mxu1 %v1208_v0 }
  0xff   : > { %1060 = vmatpush3.msra.mxu1 %v501_v55 }
 0x100   : > { %1061 = vmatprep.subr.mxu1 %v1208_v0 }
 0x101   : > { %1062 = vmatpush3.msra.mxu1 %v500_v56 }
 0x102   : > { %1063 = vmatprep.subr.mxu1 %v1208_v0 }
 0x103   : > { %1064 = vmatpush3.msra.mxu1 %v499_v57 }
 0x104   : > { %1066 = vmatmul.mubr.f32.vlgmr.msra.gmra.mxu1 %v159_v58  ;;  %1103 = vmatprep.subr.mxu1 %v1208_v0 }
 0x105   : > { %1135 = vmatprep.mubr.msk.f32.mxu1 %vm1209_vm0, %v1208_v0  ;;  %1104 = vmatpush3.msra.mxu1 %v689_v16 }
 0x106   : > { %1105 = vmatprep.subr.mxu1 %v1208_v0 }
 0x107   : > { %1106 = vmatpush3.msra.mxu1 %v688_v17 }
 0x108   : > { %1107 = vmatprep.subr.mxu1 %v1208_v0 }
 0x109   : > { %1108 = vmatpush3.msra.mxu1 %v687_v18 }
 0x10a   : > { %1109 = vmatprep.subr.mxu1 %v1208_v0 }
 0x10b   : > { %1110 = vmatpush3.msra.mxu1 %v686_v19 }
 0x10c   : > { %1111 = vmatprep.subr.mxu1 %v1208_v0 }
 0x10d   : > { %1112 = vmatpush3.msra.mxu1 %v685_v20 }
 0x10e   : > { %1113 = vmatprep.subr.mxu1 %v1208_v0 }
 0x10f   : > { %1114 = vmatpush3.msra.mxu1 %v684_v21 }
 0x110   : > { %1115 = vmatprep.subr.mxu1 %v1208_v0 }
 0x111   : > { %1116 = vmatpush3.msra.mxu1 %v683_v22 }
 0x112   : > { %1117 = vmatprep.subr.mxu1 %v1208_v0 }
 0x113   : > { %1118 = vmatpush3.msra.mxu1 %v682_v23 }
 0x114   : > { %1119 = vmatprep.subr.mxu1 %v1208_v0 }
 0x115   : > { %1120 = vmatpush3.msra.mxu1 %v681_v24 }
 0x116   : > { %1121 = vmatprep.subr.mxu1 %v1208_v0 }
 0x117   : > { %1122 = vmatpush3.msra.mxu1 %v680_v25 }
 0x118   : > { %1123 = vmatprep.subr.mxu1 %v1208_v0 }
 0x119   : > { %1124 = vmatpush3.msra.mxu1 %v679_v26 }
 0x11a   : > { %1125 = vmatprep.subr.mxu1 %v1208_v0 }
 0x11b   : > { %1126 = vmatpush3.msra.mxu1 %v678_v27 }
 0x11c   : > { %1127 = vmatprep.subr.mxu1 %v1208_v0 }
 0x11d   : > { %1128 = vmatpush3.msra.mxu1 %v677_v28 }
 0x11e   : > { %1129 = vmatprep.subr.mxu1 %v1208_v0 }
 0x1a4   : > { %v325_v30 = vpop.f32.mrf.mxu1 }
 0x1a5   : > { %v326_v31 = vadd.f32 %v859_v29, %v325_v30  ;;  %v861_v29 = vld [vmem:[#allocation2 + $0x1] ss:$0 sm:$0xff] }
 0x1a6   : > { %v992_v32 = vpop.f32.mrf.mxu1 }
 0x1a7   : > { %v329_v33 = vmax.f32 %v326_v31, 0.0 }
 0x1a9   : > { %994 = vmatpush3.msra.mxu0 %v329_v33 }
 0x1aa   : > { %996 = vmatmul.mubr.msk.f32.vlgmr.msra.gmra.mxu0 %vm165_vm1, %v1272_v2  ;;  %998 = vmatprep.subr.mxu0 %v1208_v0  ;;  %v598_v2 = vld [vmem:[#allocation2 + $0x1e0] sm:$0xff] }
 0x1ab   : > { %999 = vmatpush3.msra.mxu0 %v415_v34  ;;  %1030 = vmatprep.mubr.msk.f32.mxu0 %vm1209_vm0, %v1208_v0 }
 0x1ac   : > { %1000 = vmatprep.subr.mxu0 %v1208_v0 }
 0x1ad   : > { %1001 = vmatpush3.msra.mxu0 %v414_v35 }
 0x1ae   : > { %1002 = vmatprep.subr.mxu0 %v1208_v0 }
 0x1af   : > { %1003 = vmatpush3.msra.mxu0 %v413_v36  ;;  %v162_v36 = vld [vmem:[#allocation2 + $0x2] sm:$0x1] }
 0x1b0   : > { %1004 = vmatprep.subr.mxu0 %v1208_v0 }
 0x1b1   : > { %1005 = vmatpush3.msra.mxu0 %v412_v37 }
 0x1b2   : > { %1006 = vmatprep.subr.mxu0 %v1208_v0 }
 0x1b3   : > { %1007 = vmatpush3.msra.mxu0 %v411_v38 }
 0x1b4   : > { %1008 = vmatprep.subr.mxu0 %v1208_v0 }
 0x1b5   : > { %1009 = vmatpush3.msra.mxu0 %v410_v39 }
 0x1b6   : > { %1010 = vmatprep.subr.mxu0 %v1208_v0 }
 0x1b7   : > { %1011 = vmatpush3.msra.mxu0 %v409_v40 }
 0x1b8   : > { %1012 = vmatprep.subr.mxu0 %v1208_v0 }
 0x1b9   : > { %1013 = vmatpush3.msra.mxu0 %v408_v41 }
 0x1ba   : > { %1014 = vmatprep.subr.mxu0 %v1208_v0 }
 0x1bb   : > { %1015 = vmatpush3.msra.mxu0 %v407_v42 }
 0x1bc   : > { %1016 = vmatprep.subr.mxu0 %v1208_v0 }
 0x1bd   : > { %1017 = vmatpush3.msra.mxu0 %v406_v43 }
 0x1be   : > { %1018 = vmatprep.subr.mxu0 %v1208_v0 }
 0x1bf   : > { %1019 = vmatpush3.msra.mxu0 %v405_v44 }
 0x1c0   : > { %1020 = vmatprep.subr.mxu0 %v1208_v0 }
 0x1c1   : > { %1021 = vmatpush3.msra.mxu0 %v404_v45  ;;  %v676_v45 = vld [vmem:[#allocation2 + $0x218] sm:$0xff] }
 0x1c2   : > { %1022 = vmatprep.subr.mxu0 %v1208_v0  ;;  %1130 = vmatpush3.msra.mxu1 %v676_v45 }
 0x1c3   : > { %1023 = vmatpush3.msra.mxu0 %v403_v46  ;;  %1131 = vmatprep.subr.mxu1 %v1208_v0  ;;  %v675_v46 = vld [vmem:[#allocation2 + $0x210] sm:$0xff] }
 0x1c4   : > { %1024 = vmatprep.subr.mxu0 %v1208_v0  ;;  %v1350_v10 = vpop.f32.mrf.mxu1  ;;  %1132 = vmatpush3.msra.mxu1 %v675_v46 }
 0x1c5   : > { %1025 = vmatpush3.msra.mxu0 %v402_v47  ;;  %v582_v39 = vadd.f32 %v1350_v10, %v162_v36  ;;  %1133 = vmatprep.subr.mxu1 %v1208_v0  ;;  %v674_v47 = vld [vmem:[#allocation2 + $0x208] sm:$0xff] }
 0x1c6   : > { %1026 = vmatprep.subr.mxu0 %v1208_v0  ;;  %v1067_v12 = vpop.f32.mrf.mxu1  ;;  %1134 = vmatpush3.msra.mxu1 %v674_v47 }
 0x1c7   : > { %1027 = vmatpush3.msra.mxu0 %v401_v48  ;;  %v585_v42 = vmax.f32 %v582_v39, 0.0  ;;  %v163_v48 = vld [vmem:[#allocation2 + $0x3] sm:$0x1] }
 0x1c8   : > { %1028 = vmatprep.subr.mxu0 %v1208_v0 }
 0x1c9   : > { %1029 = vmatpush3.msra.mxu0 %v400_v50 }
 0x1ca   : > { %1068 = vmatprep.subr.mxu0 %v1208_v0 }
 0x26a   : > { %v396_v60 = vpop.f32.mrf.mxu0 }
 0x26b   : > { %1031 = vmatmul.mubr.f32.vlgmr.msra.gmra.mxu0 %v396_v60 }
 0x26c   : > { %v997_v62 = vpop.f32.mrf.mxu0  ;;  %1069 = vmatpush3.msra.mxu0 %v602_v59  ;;  %1100 = vmatprep.mubr.msk.f32.mxu0 %vm1209_vm0, %v1208_v0 }
 0x26d   : > { %1070 = vmatprep.subr.mxu0 %v1208_v0 }
 0x26e   : > { %1071 = vmatpush3.msra.mxu0 %v601_v61 }
 0x26f   : > { %1072 = vmatprep.subr.mxu0 %v1208_v0 }
 0x270   : > { %1073 = vmatpush3.msra.mxu0 %v600_v63 }
 0x271   : > { %1074 = vmatprep.subr.mxu0 %v1208_v0 }
 0x272   : > { %1075 = vmatpush3.msra.mxu0 %v599_v1 }
 0x273   : > { %1076 = vmatprep.subr.mxu0 %v1208_v0 }
 0x274   : > { %1077 = vmatpush3.msra.mxu0 %v598_v2 }
 0x275   : > { %1078 = vmatprep.subr.mxu0 %v1208_v0 }
 0x276   : > { %1079 = vmatpush3.msra.mxu0 %v597_v3 }
 0x277   : > { %1080 = vmatprep.subr.mxu0 %v1208_v0 }
 0x278   : > { %1081 = vmatpush3.msra.mxu0 %v596_v4 }
 0x279   : > { %1082 = vmatprep.subr.mxu0 %v1208_v0 }
 0x27a   : > { %1083 = vmatpush3.msra.mxu0 %v595_v5 }
 0x27b   : > { %1084 = vmatprep.subr.mxu0 %v1208_v0 }
 0x27c   : > { %1085 = vmatpush3.msra.mxu0 %v594_v6 }
 0x27d   : > { %1086 = vmatprep.subr.mxu0 %v1208_v0 }
 0x27e   : > { %1087 = vmatpush3.msra.mxu0 %v593_v7 }
 0x27f   : > { %1088 = vmatprep.subr.mxu0 %v1208_v0 }
 0x280   : > { %1089 = vmatpush3.msra.mxu0 %v592_v8 }
 0x281   : > { %1090 = vmatprep.subr.mxu0 %v1208_v0 }
 0x282   : > { %1091 = vmatpush3.msra.mxu0 %v591_v9 }
 0x283   : > { %1092 = vmatprep.subr.mxu0 %v1208_v0 }
 0x284   : > { %1093 = vmatpush3.msra.mxu0 %v590_v11 }
 0x285   : > { %1094 = vmatprep.subr.mxu0 %v1208_v0 }
 0x286   : > { %1095 = vmatpush3.msra.mxu0 %v589_v13 }
 0x287   : > { %1096 = vmatprep.subr.mxu0 %v1208_v0 }
 0x288   : > { %1097 = vmatpush3.msra.mxu0 %v588_v14 }
 0x289   : > { %1098 = vmatprep.subr.mxu0 %v1208_v0 }
 0x28a   : > { %1099 = vmatpush3.msra.mxu0 %v587_v15 }
 0x32b   : > { %v486_v30 = vpop.f32.mrf.mxu0 }
 0x32c   : > { %v487_v31 = vadd.f32 %v861_v29, %v486_v30 }
 0x32d   : > { %v1032_v32 = vpop.f32.mrf.mxu0 }
 0x32e   : > { %v490_v33 = vmax.f32 %v487_v31, 0.0 }
 0x330   : > { %v491_v34 = vrot.slane %v490_v33, 4 }
 0x332   : > { %v492_v35 = vadd.f32 %v491_v34, %v490_v33 }
 0x334   : > { %v493_v37 = vrot.slane %v492_v35, 2 }
 0x336   : > { %v494_v38 = vadd.f32 %v493_v37, %v492_v35 }
 0x338   : > { %v495_v40 = vrot.slane %v494_v38, 1 }
 0x33a   : > { %v496_v41 = vadd.f32 %v495_v40, %v494_v38 }
 0x33c   : > { %v498_v43 = vmul.f32 0.125, %v496_v41 }
 0x33e   : > { %v586_v44 = vadd.f32 %v585_v42, %v498_v43 }
 0x340   : > { %1101 = vmatmul.mubr.f32.vlgmr.msra.gmra.mxu0 %v586_v44 }
 0x400   : > { %v669_v49 = vpop.f32.mrf.mxu0 }
 0x401   : > { %v670_v50 = vadd.f32 %v669_v49, %v163_v48 }
 0x402   : > { %v1102_v51 = vpop.f32.mrf.mxu0 }
 0x403   : > { %v673_v52 = vmax.f32 %v670_v50, 0.0 }
 0x405   : > { %1136 = vmatmul.mubr.f32.vlgmr.msra.gmra.mxu1 %v673_v52 }
 0x4c5   : > { %v756_v54 = vpop.f32.mrf.mxu1 }
 0x4c6   : > { %v757_v55 = vadd.f32 %v756_v54, %v164_v53 }
 0x4c7   : > { %v1137_v56 = vpop.f32.mrf.mxu1 }
 0x4c8   : > { %773 = vrot.lane.b32.xlu1 %v757_v55, %s1210_s23  ;;  %v761_v57 = vsel %vm760_vm2, %v757_v55, -inf }
 0x4c9   : > { %762 = vmax.xlane.f32.xlu0 %v761_v57 }
 0x53a   : > { %v774_v2 = vpop.permute.xlu1 %773 }
 0x552   : > { %v763_v58 = vpop.xlane.xlu0 %762 }
 0x553   : > { %v764_v0 = vsub.f32 %v757_v55, %v763_v58 }
 0x555   : > { %v765_v59 = vmul.f32 1.442695, %v764_v0 }
 0x557   : > { %1163 = vpow2.f32 %v765_v59 }
 0x564   : > { %v1164_v60 = vpop.eup %1163 }
 0x565   : > { %v767_v61 = vsel %vm760_vm2, %v1164_v60, 0.0 }
 0x566   : > { %768 = vadd.xlane.f32.xlu0 %v767_v61 }
 0x5ef   : > { %v769_v62 = vpop.xlane.xlu0 %768 }
 0x5f0   : > { %1165 = vrcp.f32 %v769_v62 }
 0x5fd   : > { %v1166_v63 = vpop.eup %1165 }
 0x5fe   : > { %v771_v1 = vmul.f32 %v1166_v63, %v1164_v60 }
 0x600   : > { %v776_v3 = vsel %vm165_vm1, %v771_v1, %v774_v2 }
 0x601   : > { %v778_v4 = vsel %vm777_vm3, %v776_v3, %v774_v2 }
 0x602   : > { %v780_v5 = vsel %vm779_vm4, %v778_v4, 0.0 }
 0x603   : > { %v782_v6 = vsel %vm781_vm5, %v780_v5, 0.0 }
 0x604   : > { %783 = vst [vmem:[%s156_s27] sm:$0xff] %v782_v6 }
 0x605 PF: > { %s13_s9 = sadd.s32 1, %s1203_s9  }
 0x606   : > { %p10_p1 = scmp.ge.s32.totalorder %s13_s9, 6  }
 0x608   :  { %12 = sbr.rel (!%p10_p1) target bundleno = 1 (0x1), region = 63 }
 0x60d   :  { %803 = vsyncpa [#allocation3], 1 }
 0x60e   :  { %805 = vsyncpa [#allocation3 + $0x1], 1 }

</bundles_post_ra>
